<compile_context>
chip_gen: v6e
topology: v6e:2x2x1
jax: 0.10.0
libtpu: 0.0.40
codegen_flags: <defaults>
</compile_context>

<pallas_src>
import jax
import jax.numpy as jnp
from jax.experimental import pallas as pl
from jax.experimental.pallas import tpu as pltpu


def _round_up(a, b):
    return (a + b - 1) // b * b


def _feature_groups(dim, group):
    """Replicates the torch.split grouping in GraphConvolution.forward."""
    if dim >= group:
        gs = dim // group
        remain = dim % group
        splits = [list(range(g * gs, (g + 1) * gs)) for g in range(group)]
        if remain:
            splits[-1] = splits[-1] + list(range(dim - remain, dim))
    else:
        splits = [[d] for d in range(dim)]
    return splits


def _grouped_projection(x, weight, splits):
    """z[g] = x[:, cols_g] @ W[cols_g, :]  -> (G, N, OUT) float32 (groups are contiguous)."""
    zs = []
    for s in splits:
        lo, hi = s[0], s[-1] + 1
        zs.append(jnp.dot(x[:, lo:hi], weight[lo:hi, :],
                          preferred_element_type=jnp.float32))
    return jnp.stack(zs, axis=0)


def _gcn_accum_kernel(adj_ref, z_ref, b_ref, out_ref):
    """One grid step = (row tile i, group g, contraction tile k).

    adj_ref : (TM, TK)       bf16 adjacency tile of group g
    z_ref   : (TK, OUT_pad)  bf16 projected features of group g
    b_ref   : (1, OUT_pad)   f32 bias
    out_ref : (TM, OUT_pad)  f32 output tile, resident across (g, k)
    """
    g = pl.program_id(1)
    k = pl.program_id(2)

    @pl.when((g == 0) & (k == 0))
    def _():
        out_ref[...] = jnp.zeros_like(out_ref)

    out_ref[...] += jnp.dot(adj_ref[...], z_ref[...],
                            preferred_element_type=jnp.float32)

    @pl.when((g == pl.num_programs(1) - 1) & (k == pl.num_programs(2) - 1))
    def _():
        out_ref[...] += b_ref[...]


def graph_convolution(x, adj, weight, bias=None, group=1, *,
                      tile=512, compute_dtype=jnp.bfloat16):
    """x: [N, F], adj: [G, N, N] dense stack, weight: [F, OUT], bias: [OUT] or None."""
    N, F = x.shape
    splits = _feature_groups(F, group)
    G = len(splits)
    assert adj.shape == (G, N, N), "need one (dense) adjacency per feature group"
    OUT = weight.shape[1]

    if bias is None:
        bias = jnp.zeros((OUT,), jnp.float32)

    # Reassociated per-group projection (tiny; handles ragged/remainder groups).
    z = _grouped_projection(x, weight, splits)               # (G, N, OUT) f32

    # Lane-dense / tile-divisible zero padding (padded rows/cols contribute 0).
    out_pad = _round_up(OUT, 128)
    tm = tk = min(tile, _round_up(N, 128))
    n_pad = _round_up(N, tm)

    adj_p = jnp.pad(adj, ((0, 0), (0, n_pad - N), (0, n_pad - N))).astype(compute_dtype)
    z_p = jnp.pad(z, ((0, 0), (0, n_pad - N), (0, out_pad - OUT))).astype(compute_dtype)
    b_p = jnp.pad(bias.astype(jnp.float32), (0, out_pad - OUT)).reshape(1, out_pad)

    grid = (n_pad // tm, G, n_pad // tk)

    itemsize = jnp.dtype(compute_dtype).itemsize
    vmem_bytes = (2 * tm * tk * itemsize            # adj tile, double-buffered
                  + 2 * tk * out_pad * itemsize     # z tile, double-buffered
                  + 2 * tm * out_pad * 4            # resident f32 output tile
                  + 2 * out_pad * 4)                # bias
    vmem_limit = int(min(max(2 * vmem_bytes, 16 << 20), 60 << 20))

    cost = pl.CostEstimate(
        flops=2 * G * n_pad * n_pad * out_pad,
        transcendentals=0,
        bytes_accessed=(adj_p.size * itemsize + z_p.size * itemsize
                        + n_pad * out_pad * 4 + out_pad * 4),
    )

    y_pad = pl.pallas_call(
        _gcn_accum_kernel,
        out_shape=jax.ShapeDtypeStruct((n_pad, out_pad), jnp.float32),
        grid_spec=pltpu.PrefetchScalarGridSpec(
            num_scalar_prefetch=0,
            grid=grid,
            in_specs=[
                # adj[g] tile (TM, TK); leading group dim squeezed away.
                pl.BlockSpec((pl.Squeezed(), tm, tk), lambda i, g, k: (g, i, k)),
                # z[g] tile (TK, OUT_pad).
                pl.BlockSpec((pl.Squeezed(), tk, out_pad), lambda i, g, k: (g, k, 0)),
                # bias (1, OUT_pad), same block every step.
                pl.BlockSpec((1, out_pad), lambda i, g, k: (0, 0)),
            ],
            out_specs=pl.BlockSpec((tm, out_pad), lambda i, g, k: (i, 0)),
        ),
        compiler_params=pltpu.CompilerParams(
            dimension_semantics=("parallel", "arbitrary", "arbitrary"),
            vmem_limit_bytes=vmem_limit,
        ),
        cost_estimate=cost,
    )(adj_p, z_p, b_p)

    return y_pad[:N, :OUT].astype(x.dtype)


if __name__ == "__main__":
    # Small shapes consistent with the module: N nodes, F=in_features,
    # G=group, OUT=out_features.
    N, F, G, OUT = 64, 32, 4, 16

    key = jax.random.PRNGKey(0)
    k1, k2, k3, k4 = jax.random.split(key, 4)

    x = jax.random.normal(k1, (N, F), dtype=jnp.float32)
    # Dense "adjacency" stack (values in [0,1); semantics only need a matmul).
    adj = jax.random.uniform(k2, (G, N, N), dtype=jnp.float32)

    # reset_parameters(): normal_(mean=-stdv, std=stdv), stdv = 1/sqrt(out_features)
    stdv = 1.0 / (OUT ** 0.5)
    weight = jax.random.normal(k3, (F, OUT), dtype=jnp.float32) * stdv - stdv
    bias = jax.random.normal(k4, (OUT,), dtype=jnp.float32) * stdv - stdv

    y = graph_convolution(x, adj, weight, bias, G)
    y = jax.block_until_ready(y)
    assert y.shape == (N, OUT)

    # 1) Pure-f32 reference of the PyTorch forward (semantic check; bf16-level tol).
    splits = _feature_groups(F, G)
    h = jnp.concatenate(
        [adj[g] @ x[:, s[0]:s[-1] + 1] for g, s in enumerate(splits)], axis=1)
    ref_f32 = h @ weight + bias
    assert jnp.allclose(y, ref_f32, atol=0.5, rtol=0.05), "semantic mismatch vs f32 reference"

    # 2) bf16-matched reference (tight structural check of the kernel path).
    z = _grouped_projection(x, weight, splits)
    ref_bf16 = sum(
        jnp.dot(adj[g].astype(jnp.bfloat16), z[g].astype(jnp.bfloat16),
                preferred_element_type=jnp.float32) for g in range(G)) + bias
    assert jnp.allclose(y, ref_bf16, atol=1e-2, rtol=1e-2), "kernel mismatch vs bf16 reference"

    print("KERNEL_OK")
</pallas_src>

<mosaic_0001>
module attributes {stable_mosaic.version = 11 : i64} {
  func.func @_gcn_accum_kernel(%arg0: i32, %arg1: i32, %arg2: i32, %arg3: memref<1x128x128xbf16, #tpu.memory_space<vmem>>, %arg4: memref<1x128x128xbf16, #tpu.memory_space<vmem>>, %arg5: memref<1x128xf32, #tpu.memory_space<vmem>>, %arg6: memref<128x128xf32, #tpu.memory_space<vmem>>) attributes {dimension_semantics = [#tpu.dimension_semantics<parallel>, #tpu.dimension_semantics<arbitrary>, #tpu.dimension_semantics<arbitrary>], iteration_bounds = array<i64: 1, 4, 1>, scalar_prefetch = 0 : i64, scratch_operands = 0 : i64, tpu.core_type = #tpu.core_type<tc>, window_params = [{transform_indices = @transform_0, window_bounds = array<i64: 1, 128, 128>}, {transform_indices = @transform_1, window_bounds = array<i64: 1, 128, 128>}, {pipeline_mode = #tpu.pipeline_mode<synchronous>, transform_indices = @transform_2, window_bounds = array<i64: 1, 128>}, {transform_indices = @transform_3, window_bounds = array<i64: 128, 128>}]} {
    %c0_i32 = arith.constant 0 : i32
    %0 = arith.cmpi eq, %arg1, %c0_i32 : i32
    %c0_i32_0 = arith.constant 0 : i32
    %1 = arith.cmpi eq, %arg2, %c0_i32_0 : i32
    %2 = arith.andi %0, %1 : i1
    %3 = arith.extui %2 : i1 to i32
    %c0_i32_1 = arith.constant 0 : i32
    %4 = arith.cmpi ne, %3, %c0_i32_1 : i32
    scf.if %4 {
      %cst_13 = arith.constant 0.000000e+00 : f32
      %18 = vector.broadcast %cst_13 : f32 to vector<128x128xf32>
      %c0_14 = arith.constant 0 : index
      %c0_15 = arith.constant 0 : index
      %19 = vector.load %arg6[%c0_14, %c0_15] : memref<128x128xf32, #tpu.memory_space<vmem>>, vector<128x128xf32>
      tpu.vector_store %arg6[%c0_14, %c0_15], %18 {strides = array<i32>} : memref<128x128xf32, #tpu.memory_space<vmem>>, vector<128x128xf32>,
    } else {
    }
    %c0 = arith.constant 0 : index
    %c0_2 = arith.constant 0 : index
    %5 = vector.load %arg6[%c0, %c0_2] : memref<128x128xf32, #tpu.memory_space<vmem>>, vector<128x128xf32>
    %c0_3 = arith.constant 0 : index
    %c0_4 = arith.constant 0 : index
    %c0_5 = arith.constant 0 : index
    %6 = vector.load %arg3[%c0_3, %c0_4, %c0_5] : memref<1x128x128xbf16, #tpu.memory_space<vmem>>, vector<1x128x128xbf16>
    %7 = vector.shape_cast %6 : vector<1x128x128xbf16> to vector<128x128xbf16>
    %c0_6 = arith.constant 0 : index
    %c0_7 = arith.constant 0 : index
    %c0_8 = arith.constant 0 : index
    %8 = vector.load %arg4[%c0_6, %c0_7, %c0_8] : memref<1x128x128xbf16, #tpu.memory_space<vmem>>, vector<1x128x128xbf16>
    %9 = vector.shape_cast %8 : vector<1x128x128xbf16> to vector<128x128xbf16>
    %cst = arith.constant dense<0.000000e+00> : vector<128x128xf32>
    %10 = tpu.matmul %7, %9, %cst {dimension_numbers = #tpu.dot_dimension_numbers<[1], [0], [0], [1], [0, 0, 1, 1], [], []>} : vector<128x128xbf16>, vector<128x128xbf16>, vector<128x128xf32> -> vector<128x128xf32>
    %11 = arith.addf %5, %10 : vector<128x128xf32>
    %c0_9 = arith.constant 0 : index
    %c0_10 = arith.constant 0 : index
    %12 = vector.load %arg6[%c0_9, %c0_10] : memref<128x128xf32, #tpu.memory_space<vmem>>, vector<128x128xf32>
    tpu.vector_store %arg6[%c0_9, %c0_10], %11 {strides = array<i32>} : memref<128x128xf32, #tpu.memory_space<vmem>>, vector<128x128xf32>,
    %c3_i32 = arith.constant 3 : i32
    %13 = arith.cmpi eq, %arg1, %c3_i32 : i32
    %c0_i32_11 = arith.constant 0 : i32
    %14 = arith.cmpi eq, %arg2, %c0_i32_11 : i32
    %15 = arith.andi %13, %14 : i1
    %16 = arith.extui %15 : i1 to i32
    %c0_i32_12 = arith.constant 0 : i32
    %17 = arith.cmpi ne, %16, %c0_i32_12 : i32
    scf.if %17 {
      %c0_13 = arith.constant 0 : index
      %c0_14 = arith.constant 0 : index
      %18 = vector.load %arg6[%c0_13, %c0_14] : memref<128x128xf32, #tpu.memory_space<vmem>>, vector<128x128xf32>
      %c0_15 = arith.constant 0 : index
      %c0_16 = arith.constant 0 : index
      %19 = vector.load %arg5[%c0_15, %c0_16] : memref<1x128xf32, #tpu.memory_space<vmem>>, vector<1x128xf32>
      %20 = vector.broadcast %19 : vector<1x128xf32> to vector<128x128xf32>
      %21 = arith.addf %18, %20 : vector<128x128xf32>
      %c0_17 = arith.constant 0 : index
      %c0_18 = arith.constant 0 : index
      %22 = vector.load %arg6[%c0_17, %c0_18] : memref<128x128xf32, #tpu.memory_space<vmem>>, vector<128x128xf32>
      tpu.vector_store %arg6[%c0_17, %c0_18], %21 {strides = array<i32>} : memref<128x128xf32, #tpu.memory_space<vmem>>, vector<128x128xf32>,
    } else {
    }
    return
  }
  func.func @transform_0(%arg0: i32, %arg1: i32, %arg2: i32) -> (i32, i32, i32) {
    %c0_i32 = arith.constant 0 : i32
    return %arg1, %arg0, %arg2 : i32, i32, i32
  }
  func.func @transform_1(%arg0: i32, %arg1: i32, %arg2: i32) -> (i32, i32, i32) {
    %c0_i32 = arith.constant 0 : i32
    %c0_i32_0 = arith.constant 0 : i32
    return %arg1, %arg2, %c0_i32 : i32, i32, i32
  }
  func.func @transform_2(%arg0: i32, %arg1: i32, %arg2: i32) -> (i32, i32) {
    %c0_i32 = arith.constant 0 : i32
    %c0_i32_0 = arith.constant 0 : i32
    %c0_i32_1 = arith.constant 0 : i32
    return %c0_i32, %c0_i32_0 : i32, i32
  }
  func.func @transform_3(%arg0: i32, %arg1: i32, %arg2: i32) -> (i32, i32) {
    %c0_i32 = arith.constant 0 : i32
    %c0_i32_0 = arith.constant 0 : i32
    return %arg0, %c0_i32 : i32, i32
  }
}

</mosaic_0001>

<bundles_post_ra>
// kernel: tpu_custom_call.1
= control target key start
LH: loop header
LB: loop body
LE: loop exit
PB: predicated region body
PF: predicated region fallthrough
CT: control target
= control target key end

     0   :  { %8 = vsyncpa [#allocation3], 0  ;;  %s1243_s0 = inlined_call_operand.hbm [shape: bf16[4,128,128], index: 0, kind: input, shape index: {}]   ;;  %s1244_s1 = inlined_call_operand.hbm [shape: bf16[4,128,128], index: 1, kind: input, shape index: {}]   ;;  %s1245_s2 = inlined_call_operand.vmem [shape: f32[1,128], index: 2, kind: input, shape index: {}]   ;;  %s1246_s3 = inlined_call_operand.hbm [shape: f32[128,128], index: 3, kind: output, shape index: {}]  }
   0x1   :  { %10 = vsyncpa [#allocation3 + $0x1], 0 }
   0x2   :  { %11 = vsyncpa [#allocation6], 0 }
   0x3   :  { %13 = vsyncpa [#allocation6 + $0x1], 0 }
   0x4   :  { %14 = vsyncpa [#allocation4], 0  ;;  %s1076_s12 = smov 0   ;;  %s1078_s13 = smov 0  }
   0x5   :  { %s1080_s14 = smov 0   ;;  %s1082_s15 = smov 0  }
   0x6   :  { %s1084_s16 = smov 0   ;;  %s1086_s17 = smov 0  }
   0x7 LB: > { %s717_s18 = sadd.s32 4294967295, %s1046_s17   ;;  %s35_s19 = sadd.s32 1, %s1042_s16  ;;  %s1046_s17 = sphi %s1086_s17, %s20_s17   ;;  %s1042_s16 = sphi %s1084_s16, %s1256_s16   ;;  %s1038_s15 = sphi %s1082_s15, %s1255_s15   ;;  %s1034_s14 = sphi %s1080_s14, %s1254_s14   ;;  %s1030_s13 = sphi %s1078_s13, %s1253_s13   ;;  %s1026_s12 = sphi %s1076_s12, %s1252_s12  }
   0x8   : > { %p37_p0 = scmp.ge.s32.totalorder %s35_s19, 4  ;;  %s50_s20 = sadd.s32 1, %s1034_s14 }
   0x9   : > { %p57_p1 = scmp.ne.s32.totalorder %s1034_s14, %s1030_s13  ;;  %p58_p2 = scmp.eq.s32.totalorder %s1046_s17, 0 }
   0xa   : > { %s1258_s19 = smov (%p37_p0, %s35_s19), 0  ;;  %p63_p4 = scmp.ne.s32.totalorder %s1030_s13, %s1026_s12 }
   0xb   : > { %p1112_p3 = por %p58_p2, %p57_p1  ;;  %s43_s22 = ssub.s32 %s1042_s16, %s1258_s19 }
   0xc   : > { %p64_p5 = scmp.eq.s32.totalorder %s717_s18, 0  ;;  %p48_p6 = scmp.eq.s32.totalorder %s43_s22, 0 }
   0xd   : > { %p835_p8 = scmp.lt.s32.totalorder %s1046_s17, 4  ;;  %s1130_s25 = sand.u32 1, %s1034_s14  }
   0xe   : > { %p1121_p7 = por %p64_p5, %p63_p4  ;;  %s752_s26 = sshll.u32 %s1042_s16, 10 }
   0xf   : > { %s1127_s24 = scalar_select %p48_p6, %s1034_s14, %s50_s20  }
  0x10   : > { %s720_s27 = sshll.u32 %s1130_s25, 6  ;;  %s178_s30 = scalar_lea.hbm %s1243_s0, %s752_s26 }
  0x11   : > { %s169_s4 = scalar_lea.vmem [#allocation2], %s720_s27  ;;  %p1141_p9 = pnand %p835_p8, %p1112_p3 }
  0x12   : > { %s179_s5 = sshll.u32 %s169_s4, 4  ;;  %s166_s7 = scalar_lea.sflag [#allocation3], %s1130_s25  ;;  %s180_s5 = int_to_ptr.vmem [resolvable:$true] %s179_s5 }
  0x13   : > { %p910_p10 = pneg %p1141_p9  ;;  %s921_s8 = scalar_lea.vmem %s180_s5, 1024 }
  0x14   : > { %p922_p11 = scmp.ne.s32.totalorder %s180_s5, %s921_s8  ;;  %s1048_s9 = smov [#allocation2]  }
  0x15   : > { %s926_s10 = sshll.u32 %s1048_s9, 4  ;;  %s927_s10 = int_to_ptr.vmem [resolvable:$false] %s926_s10 }
  0x16   : > { %p924_p12 = pnand %p922_p11, %p910_p10  ;;  %s928_s11 = scalar_lea.vmem %s927_s10, 2048 }
  0x17   : > { %p929_p0 = scmp.lt.s32.totalorder %s180_s5, %s927_s10  ;;  %p930_p1 = scmp.lt.s32.totalorder %s928_s11, %s921_s8 }
  0x18   : > { %p925_p13 = pneg %p924_p12 }
  0x19   : > { %p931_p2 = por %p930_p1, %p929_p0 }
  0x1b   : > { %p932_p3 = pnand %p931_p2, %p925_p13 }
  0x1d   : > { %935 = shalt.err (!%p932_p3)
}
  0x1e   : > { %s1049_s12 = smov 64   ;;  %s1050_s20 = smov 4  }
  0x1f   : > { %831 = dma.hbm_to_vmem [thread:$0]  (!%p1141_p9), %s178_s30, 1024, %s180_s5, %s166_s7, %s1049_s12, %s1049_s12, %s1050_s20  }
  0x20   : > { %p726_p4 = scmp.ge.s32.totalorder %s1046_s17, 1  ;;  %p210_p5 = scmp.lt.s32.totalorder %s1046_s17, 5 }
  0x21   : > { %s201_s29 = scalar_lea.hbm %s1244_s1, %s752_s26  ;;  %s193_s4 = scalar_lea.vmem [#allocation5], %s720_s27 }
  0x22   : > { %p1155_p6 = pnand %p726_p4, %p210_p5  ;;  %s202_s8 = sshll.u32 %s193_s4, 4  ;;  %s203_s8 = int_to_ptr.vmem [resolvable:$true] %s202_s8 }
  0x23   : > { %s190_s9 = scalar_lea.sflag [#allocation6], %s1130_s25  ;;  %s949_s10 = scalar_lea.vmem %s203_s8, 1024 }
  0x24   : > { %p950_p8 = scmp.ne.s32.totalorder %s203_s8, %s949_s10  ;;  %s1051_s30 = smov [#allocation5]  }
  0x25   : > { %s954_s5 = sshll.u32 %s1051_s30, 4  ;;  %s955_s5 = int_to_ptr.vmem [resolvable:$false] %s954_s5 }
  0x26   : > { %p952_p11 = pnand %p950_p8, %p910_p10  ;;  %s956_s7 = scalar_lea.vmem %s955_s5, 2048 }
  0x27   : > { %p957_p13 = scmp.lt.s32.totalorder %s203_s8, %s955_s5  ;;  %p958_p0 = scmp.lt.s32.totalorder %s956_s7, %s949_s10 }
  0x28   : > { %p953_p12 = pneg %p952_p11 }
  0x29   : > { %p959_p1 = por %p958_p0, %p957_p13 }
  0x2b   : > { %p960_p2 = pnand %p959_p1, %p953_p12 }
  0x2d   : > { %963 = shalt.err (!%p960_p2)
}
  0x2e   : > { %834 = dma.hbm_to_vmem [thread:$0]  (!%p1141_p9), %s201_s29, 1024, %s203_s8, %s190_s9, %s1049_s12, %s1049_s12, %s1050_s20  }
  0x2f   : > { %214 = sbr.rel (%p1155_p6) target bundleno = 335 (0x14f), region = 32  ;;  %s216_s25 = sand.u32 (!%p1155_p6), 1, %s1030_s13  }
  0x30   : > { %s727_s26 = sshll.u32 (!%p1155_p6), %s216_s25, 6  ;;  %s217_s27 = scalar_lea.sflag (!%p1155_p6), [#allocation3], %s216_s25 }
  0x31   : > { %s1173_s11 = scalar_lea.vmem (!%p1155_p6), [#allocation2], %s727_s26 }
  0x34   : > { %1013 = dma.done.wait (%p1121_p7), %s217_s27, 1024  }
  0x35   : > { %1015 = vsyncadd (%p1121_p7), %s217_s27, 4294966272  ;;  %s226_s22 = scalar_lea.sflag [#allocation6], %s216_s25  ;;  %s1179_s28 = scalar_lea.vmem [#allocation5], %s727_s26 }
  0x36   : > { %1017 = dma.done.wait (%p1121_p7), %s226_s22, 1024  }
  0x37   : > { %1019 = vsyncadd (%p1121_p7), %s226_s22, 4294966272  ;;  %p256_p9 = scmp.eq.s32.totalorder %s1038_s15, 0 }
  0x38   : > { %v1052_v0 = vmov (%p256_p9), 0.0  }
  0x39   : > { %261 = sbr.rel (!%p256_p9) target bundleno = 65 (0x41), region = 44  ;;  %262 = vst [vmem:[#allocation7] sm:$0xff] (%p256_p9), %v1052_v0  ;;  %263 = vst [vmem:[#allocation7 + $0x8] sm:$0xff] (%p256_p9), %v1052_v0 }
  0x3a   : > { %264 = vst [vmem:[#allocation7 + $0x10] sm:$0xff] (%p256_p9), %v1052_v0  ;;  %265 = vst [vmem:[#allocation7 + $0x18] sm:$0xff] (%p256_p9), %v1052_v0 }
  0x3b   : > { %266 = vst [vmem:[#allocation7 + $0x20] sm:$0xff] (%p256_p9), %v1052_v0  ;;  %267 = vst [vmem:[#allocation7 + $0x28] sm:$0xff] (%p256_p9), %v1052_v0 }
  0x3c   : > { %268 = vst [vmem:[#allocation7 + $0x30] sm:$0xff] (%p256_p9), %v1052_v0  ;;  %269 = vst [vmem:[#allocation7 + $0x38] sm:$0xff] (%p256_p9), %v1052_v0 }
  0x3d   : > { %270 = vst [vmem:[#allocation7 + $0x40] sm:$0xff] (%p256_p9), %v1052_v0  ;;  %271 = vst [vmem:[#allocation7 + $0x48] sm:$0xff] (%p256_p9), %v1052_v0 }
  0x3e   : > { %272 = vst [vmem:[#allocation7 + $0x50] sm:$0xff] %v1052_v0  ;;  %273 = vst [vmem:[#allocation7 + $0x58] sm:$0xff] %v1052_v0 }
  0x3f   : > { %274 = vst [vmem:[#allocation7 + $0x60] sm:$0xff] %v1052_v0  ;;  %275 = vst [vmem:[#allocation7 + $0x68] sm:$0xff] %v1052_v0 }
  0x40   : > { %276 = vst [vmem:[#allocation7 + $0x70] sm:$0xff] %v1052_v0  ;;  %277 = vst [vmem:[#allocation7 + $0x78] sm:$0xff] %v1052_v0 }
  0x41 PF: > { %v892_v1 = vld [vmem:[%s1179_s28 + $0x38] sm:$0xff]   ;;  %v893_v2 = vld [vmem:[%s1179_s28 + $0x30] sm:$0xff]   ;;  %v894_v3 = vld [vmem:[%s1179_s28 + $0x28] sm:$0xff]   ;;  %p551_p7 = scmp.eq.s32.totalorder %s1038_s15, 3 }
  0x42   : > { %772 = vmatprep.subr.bf16.mxu0 %v892_v1  ;;  %804 = vmatprep.subr.bf16.mxu1 %v892_v1  ;;  %v895_v4 = vld [vmem:[%s1179_s28 + $0x20] sm:$0xff]   ;;  %v896_v7 = vld [vmem:[%s1179_s28 + $0x18] sm:$0xff]   ;;  %v897_v8 = vld [vmem:[%s1179_s28 + $0x10] sm:$0xff]  }
  0x43   : > { %773 = vmatpush3.bf16.msra.mxu0 %v892_v1  ;;  %812 = vmatpush3.bf16.msra.mxu1 %v892_v1  ;;  %v900_v5 = vld [vmem:[%s1173_s11] sm:$0xff]   ;;  %v898_v9 = vld [vmem:[%s1179_s28 + $0x8] sm:$0xff]   ;;  %v904_v13 = vld [vmem:[%s1173_s11 + $0x10] sm:$0xff]  }
  0x44   : > { %774 = vmatprep.subr.bf16.mxu0 %v893_v2  ;;  %805 = vmatprep.subr.bf16.mxu1 %v893_v2  ;;  %v901_v6 = vld [vmem:[%s1173_s11 + $0x20] sm:$0xff]   ;;  %v902_v11 = vld [vmem:[%s1173_s11 + $0x8] sm:$0xff]   ;;  %v905_v14 = vld [vmem:[%s1173_s11 + $0x30] sm:$0xff]  }
  0x45   : > { %788 = vmatprep.mubr.bf16.mxu0 %v900_v5  ;;  %796 = vmatprep.mubr.bf16.mxu1 %v901_v6  ;;  %v899_v10 = vld [vmem:[%s1179_s28] sm:$0xff]   ;;  %v903_v12 = vld [vmem:[%s1173_s11 + $0x28] sm:$0xff]   ;;  %v906_v15 = vld [vmem:[%s1173_s11 + $0x18] sm:$0xff]  }
  0x46   : > { %v907_v16 = vld [vmem:[%s1173_s11 + $0x38] sm:$0xff]   ;;  %v280_v17 = vld [vmem:[#allocation7 + $0x10] sm:$0xff]  ;;  %v278_v21 = vld [vmem:[#allocation7] sm:$0xff] }
  0x47   : > { %775 = vmatpush3.bf16.msra.mxu0 %v893_v2  ;;  %813 = vmatpush3.bf16.msra.mxu1 %v893_v2  ;;  %v288_v18 = vld [vmem:[#allocation7 + $0x50] sm:$0xff]  ;;  %v286_v22 = vld [vmem:[#allocation7 + $0x40] sm:$0xff]  ;;  %v281_v27 = vld [vmem:[#allocation7 + $0x18] sm:$0xff] }
  0x48   : > { %776 = vmatprep.subr.bf16.mxu0 %v894_v3  ;;  %806 = vmatprep.subr.bf16.mxu1 %v894_v3  ;;  %v289_v28 = vld [vmem:[#allocation7 + $0x58] sm:$0xff]  ;;  %v279_v33 = vld [vmem:[#allocation7 + $0x8] sm:$0xff]  ;;  %v284_v39 = vld [vmem:[#allocation7 + $0x30] sm:$0xff] }
  0x49   : > { %v287_v34 = vld [vmem:[#allocation7 + $0x48] sm:$0xff]  ;;  %v292_v40 = vld [vmem:[#allocation7 + $0x70] sm:$0xff]  ;;  %v282_v45 = vld [vmem:[#allocation7 + $0x20] sm:$0xff] }
  0x4a   : > { %v290_v46 = vld [vmem:[#allocation7 + $0x60] sm:$0xff]  ;;  %v285_v51 = vld [vmem:[#allocation7 + $0x38] sm:$0xff]  ;;  %v283_v57 = vld [vmem:[#allocation7 + $0x28] sm:$0xff] }
  0x4b   : > { %777 = vmatpush3.bf16.msra.mxu0 %v894_v3  ;;  %814 = vmatpush3.bf16.msra.mxu1 %v894_v3  ;;  %v293_v52 = vld [vmem:[#allocation7 + $0x78] sm:$0xff]  ;;  %v291_v58 = vld [vmem:[#allocation7 + $0x68] sm:$0xff]  ;;  %v747_v2 = vld [vmem:[%s1245_s2] ss:$0 sm:$0xff] (%p551_p7) }
  0x4c   : > { %778 = vmatprep.subr.bf16.mxu0 %v895_v4  ;;  %807 = vmatprep.subr.bf16.mxu1 %v895_v4 }
  0x4f   : > { %779 = vmatpush3.bf16.msra.mxu0 %v895_v4  ;;  %815 = vmatpush3.bf16.msra.mxu1 %v895_v4 }
  0x50   : > { %780 = vmatprep.subr.bf16.mxu0 %v896_v7  ;;  %808 = vmatprep.subr.bf16.mxu1 %v896_v7 }
  0x53   : > { %781 = vmatpush3.bf16.msra.mxu0 %v896_v7  ;;  %816 = vmatpush3.bf16.msra.mxu1 %v896_v7 }
  0x54   : > { %782 = vmatprep.subr.bf16.mxu0 %v897_v8  ;;  %809 = vmatprep.subr.bf16.mxu1 %v897_v8 }
  0x57   : > { %783 = vmatpush3.bf16.msra.mxu0 %v897_v8  ;;  %817 = vmatpush3.bf16.msra.mxu1 %v897_v8 }
  0x58   : > { %784 = vmatprep.subr.bf16.mxu0 %v898_v9  ;;  %810 = vmatprep.subr.bf16.mxu1 %v898_v9 }
  0x5b   : > { %785 = vmatpush3.bf16.msra.mxu0 %v898_v9  ;;  %818 = vmatpush3.bf16.msra.mxu1 %v898_v9 }
  0x5c   : > { %786 = vmatprep.subr.bf16.mxu0 %v899_v10  ;;  %811 = vmatprep.subr.bf16.mxu1 %v899_v10 }
  0x5f   : > { %787 = vmatpush3.bf16.msra.mxu0 %v899_v10  ;;  %819 = vmatpush3.bf16.msra.mxu1 %v899_v10 }
  0x62   : > { %789 = vmatmul.mubr.bf16.vlgmr.msra.gmra.mxu0 %v902_v11  ;;  %797 = vmatmul.mubr.bf16.vlgmr.msra.gmra.mxu1 %v903_v12 }
  0x63   : > { %792 = vmatprep.mubr.bf16.mxu0 %v904_v13  ;;  %800 = vmatprep.mubr.bf16.mxu1 %v905_v14 }
  0x6a   : > { %793 = vmatmul.mubr.bf16.gmra.mxu0 %v906_v15  ;;  %801 = vmatmul.mubr.bf16.gmra.mxu1 %v907_v16 }
 0x122   : > { %v790_v19 = vpop.f32.mrf.mxu0  ;;  %v798_v20 = vpop.f32.mrf.mxu1 }
 0x123   : > { %v521_v23 = vadd.f32 %v790_v19, %v280_v17  ;;  %v529_v24 = vadd.f32 %v798_v20, %v288_v18 }
 0x124   : > { %v456_v25 = vpop.f32.mrf.mxu0  ;;  %v488_v26 = vpop.f32.mrf.mxu1 }
 0x125   : > { %537 = vst [vmem:[#allocation7 + $0x10] sm:$0xff] %v521_v23  ;;  %545 = vst [vmem:[#allocation7 + $0x50] sm:$0xff] %v529_v24  ;;  %v519_v29 = vadd.f32 %v456_v25, %v278_v21  ;;  %v527_v30 = vadd.f32 %v488_v26, %v286_v22 }
 0x126   : > { %v791_v31 = vpop.f32.mrf.mxu0  ;;  %v799_v32 = vpop.f32.mrf.mxu1 }
 0x127   : > { %535 = vst [vmem:[#allocation7] sm:$0xff] %v519_v29  ;;  %543 = vst [vmem:[#allocation7 + $0x40] sm:$0xff] %v527_v30  ;;  %v522_v35 = vadd.f32 %v791_v31, %v281_v27  ;;  %v530_v36 = vadd.f32 %v799_v32, %v289_v28 }
 0x128   : > { %v459_v37 = vpop.f32.mrf.mxu0  ;;  %v491_v38 = vpop.f32.mrf.mxu1 }
 0x129   : > { %538 = vst [vmem:[#allocation7 + $0x18] sm:$0xff] %v522_v35  ;;  %546 = vst [vmem:[#allocation7 + $0x58] sm:$0xff] %v530_v36  ;;  %v520_v41 = vadd.f32 %v459_v37, %v279_v33  ;;  %v528_v42 = vadd.f32 %v491_v38, %v287_v34 }
 0x12a   : > { %v794_v43 = vpop.f32.mrf.mxu0  ;;  %v802_v44 = vpop.f32.mrf.mxu1 }
 0x12b   : > { %536 = vst [vmem:[#allocation7 + $0x8] sm:$0xff] %v520_v41  ;;  %544 = vst [vmem:[#allocation7 + $0x48] sm:$0xff] %v528_v42  ;;  %v525_v47 = vadd.f32 %v794_v43, %v284_v39  ;;  %v533_v48 = vadd.f32 %v802_v44, %v292_v40 }
 0x12c   : > { %v472_v49 = vpop.f32.mrf.mxu0  ;;  %v504_v50 = vpop.f32.mrf.mxu1  ;;  %v558_v6 = vld [vmem:[#allocation7 + $0x10] sm:$0xff] (%p551_p7) }
 0x12d   : > { %541 = vst [vmem:[#allocation7 + $0x30] sm:$0xff] %v525_v47  ;;  %549 = vst [vmem:[#allocation7 + $0x70] sm:$0xff] %v533_v48  ;;  %v523_v53 = vadd.f32 %v472_v49, %v282_v45  ;;  %v531_v54 = vadd.f32 %v504_v50, %v290_v46  ;;  %v581_v9 = vadd.f32 (%p551_p7), %v747_v2, %v558_v6  ;;  %v566_v20 = vld [vmem:[#allocation7 + $0x50] sm:$0xff] (%p551_p7) }
 0x12e   : > { %v795_v55 = vpop.f32.mrf.mxu0  ;;  %v803_v56 = vpop.f32.mrf.mxu1  ;;  %v556_v1 = vld [vmem:[#allocation7] sm:$0xff] (%p551_p7)  ;;  %v589_v23 = vadd.f32 (%p551_p7), %v747_v2, %v566_v20 }
 0x12f   : > { %539 = vst [vmem:[#allocation7 + $0x20] sm:$0xff] %v523_v53  ;;  %547 = vst [vmem:[#allocation7 + $0x60] sm:$0xff] %v531_v54  ;;  %v526_v59 = vadd.f32 %v795_v55, %v285_v51  ;;  %v534_v60 = vadd.f32 %v803_v56, %v293_v52  ;;  %555 = sbr.rel (!%p551_p7) target bundleno = 319 (0x13f), region = 48  ;;  %v579_v4 = vadd.f32 (%p551_p7), %v747_v2, %v556_v1  ;;  %v564_v18 = vld [vmem:[#allocation7 + $0x40] sm:$0xff] (%p551_p7) }
 0x130   : > { %v475_v61 = vpop.f32.mrf.mxu0  ;;  %v507_v62 = vpop.f32.mrf.mxu1  ;;  %v559_v7 = vld [vmem:[#allocation7 + $0x18] sm:$0xff] (%p551_p7)  ;;  %597 = vst [vmem:[#allocation7 + $0x10] sm:$0xff] (%p551_p7), %v581_v9  ;;  %v587_v21 = vadd.f32 (%p551_p7), %v747_v2, %v564_v18  ;;  %605 = vst [vmem:[#allocation7 + $0x50] sm:$0xff] (%p551_p7), %v589_v23 }
 0x131   : > { %542 = vst [vmem:[#allocation7 + $0x38] sm:$0xff] %v526_v59  ;;  %550 = vst [vmem:[#allocation7 + $0x78] sm:$0xff] %v534_v60  ;;  %v524_v63 = vadd.f32 %v475_v61, %v283_v57  ;;  %v532_v0 = vadd.f32 %v507_v62, %v291_v58  ;;  %v582_v10 = vadd.f32 (%p551_p7), %v747_v2, %v559_v7  ;;  %v567_v24 = vld [vmem:[#allocation7 + $0x58] sm:$0xff] (%p551_p7) }
 0x132   : > { %v557_v3 = vld [vmem:[#allocation7 + $0x8] sm:$0xff] (%p551_p7)  ;;  %595 = vst [vmem:[#allocation7] sm:$0xff] (%p551_p7), %v579_v4  ;;  %v590_v27 = vadd.f32 (%p551_p7), %v747_v2, %v567_v24  ;;  %603 = vst [vmem:[#allocation7 + $0x40] sm:$0xff] (%p551_p7), %v587_v21 }
 0x133   : > { %540 = vst [vmem:[#allocation7 + $0x28] sm:$0xff] %v524_v63  ;;  %548 = vst [vmem:[#allocation7 + $0x68] sm:$0xff] %v532_v0  ;;  %v580_v5 = vadd.f32 (%p551_p7), %v747_v2, %v557_v3  ;;  %v565_v19 = vld [vmem:[#allocation7 + $0x48] sm:$0xff] (%p551_p7) }
 0x134   : > { %v562_v13 = vld [vmem:[#allocation7 + $0x30] sm:$0xff]  ;;  %598 = vst [vmem:[#allocation7 + $0x18] sm:$0xff] %v582_v10  ;;  %v588_v22 = vadd.f32 %v747_v2, %v565_v19  ;;  %606 = vst [vmem:[#allocation7 + $0x58] sm:$0xff] %v590_v27 }
 0x135   : > { %596 = vst [vmem:[#allocation7 + $0x8] sm:$0xff] %v580_v5  ;;  %v585_v16 = vadd.f32 %v747_v2, %v562_v13  ;;  %v570_v30 = vld [vmem:[#allocation7 + $0x70] sm:$0xff] }
 0x136   : > { %v560_v8 = vld [vmem:[#allocation7 + $0x20] sm:$0xff]  ;;  %604 = vst [vmem:[#allocation7 + $0x48] sm:$0xff] %v588_v22  ;;  %v593_v32 = vadd.f32 %v747_v2, %v570_v30 }
 0x137   : > { %v583_v11 = vadd.f32 %v747_v2, %v560_v8  ;;  %v568_v25 = vld [vmem:[#allocation7 + $0x60] sm:$0xff]  ;;  %601 = vst [vmem:[#allocation7 + $0x30] sm:$0xff] %v585_v16 }
 0x138   : > { %v563_v14 = vld [vmem:[#allocation7 + $0x38] sm:$0xff]  ;;  %v591_v28 = vadd.f32 %v747_v2, %v568_v25  ;;  %609 = vst [vmem:[#allocation7 + $0x70] sm:$0xff] %v593_v32 }
 0x139   : > { %v586_v17 = vadd.f32 %v747_v2, %v563_v14  ;;  %599 = vst [vmem:[#allocation7 + $0x20] sm:$0xff] %v583_v11  ;;  %v571_v31 = vld [vmem:[#allocation7 + $0x78] sm:$0xff] }
 0x13a   : > { %v561_v12 = vld [vmem:[#allocation7 + $0x28] sm:$0xff]  ;;  %v594_v33 = vadd.f32 %v747_v2, %v571_v31  ;;  %607 = vst [vmem:[#allocation7 + $0x60] sm:$0xff] %v591_v28 }
 0x13b   : > { %v584_v15 = vadd.f32 %v747_v2, %v561_v12  ;;  %v569_v26 = vld [vmem:[#allocation7 + $0x68] sm:$0xff]  ;;  %602 = vst [vmem:[#allocation7 + $0x38] sm:$0xff] %v586_v17 }
 0x13c   : > { %v592_v29 = vadd.f32 %v747_v2, %v569_v26  ;;  %610 = vst [vmem:[#allocation7 + $0x78] sm:$0xff] %v594_v33 }
 0x13d   : > { %600 = vst [vmem:[#allocation7 + $0x28] sm:$0xff] %v584_v15 }
 0x13e   : > { %608 = vst [vmem:[#allocation7 + $0x68] sm:$0xff] %v592_v29 }
 0x13f PF: > { %p1210_p10 = scmp.eq.s32.totalorder %s717_s18, 3  ;;  %s1053_s12 = smov [#allocation7]  }
 0x140   : > { %s620_s20 = sshll.u32 %s1053_s12, 4  ;;  %s621_s20 = int_to_ptr.vmem [resolvable:$true] %s620_s20 }
 0x141   : > { %s964_s21 = scalar_lea.vmem %s621_s20, 2048  ;;  %p971_p6 = scmp.lt.s32.totalorder %s621_s20, %s621_s20 }
 0x142   : > { %p965_p3 = scmp.ne.s32.totalorder %s621_s20, %s964_s21  ;;  %p972_p8 = scmp.lt.s32.totalorder %s964_s21, %s964_s21 }
 0x144   : > { %p966_p4 = pnand %p965_p3, %p1210_p10  ;;  %p973_p11 = por %p972_p8, %p971_p6 }
 0x146   : > { %p967_p5 = pneg %p966_p4 }
 0x148   : > { %p974_p12 = pnand %p973_p11, %p967_p5 }
 0x14a   : > { %977 = shalt.err (!%p974_p12)
}
 0x14b   : > { %s1054_s29 = smov 128   ;;  %s1055_s18 = smov 8  }
 0x14c   : > { %825 = dma.vmem_to_hbm [thread:$0]  (%p1210_p10), %s621_s20, 2048, %s1246_s3, [#allocation4], %s1054_s29, %s1054_s29, %s1055_s18  }
 0x14d   : > { %1021 = dma.done.wait (%p1210_p10), [#allocation4], 2048  }
 0x14e   : > { %1023 = vsyncadd (%p1210_p10), [#allocation4], 4294965248 }
 0x14f PF: > { %s20_s17 = sadd.s32 1, %s1046_s17   ;;  %s1252_s12 = smov %s1030_s13 }
 0x150   : > { %p17_p13 = scmp.ge.s32.totalorder %s20_s17, 6   ;;  %s1253_s13 = smov %s1034_s14 }
 0x151   : > { %s1254_s14 = smov %s1127_s24  ;;  %s1255_s15 = smov %s1042_s16 }
 0x152   : > { %s1256_s16 = smov %s1258_s19  ;;  %19 = sbr.rel (!%p17_p13) target bundleno = 7 (0x7), region = 91 }
 0x157   :  { %636 = vsyncpa [#allocation3], 1 }
 0x158   :  { %638 = vsyncpa [#allocation3 + $0x1], 1 }
 0x159   :  { %639 = vsyncpa [#allocation6], 1 }
 0x15a   :  { %641 = vsyncpa [#allocation6 + $0x1], 1 }
 0x15b   :  { %642 = vsyncpa [#allocation4], 1 }
 0x15c   :  { %644 = vsyncpa [#allocation4 + $0x1], 1 }

</bundles_post_ra>
